<compile_context>
chip_gen: v7x
topology: tpu7x:2x2x1
jax: 0.10.0
libtpu: 0.0.40
codegen_flags: <defaults>
</compile_context>

<pallas_src>
import jax
import jax.numpy as jnp
from jax.experimental import pallas as pl
from jax.experimental.pallas import tpu as pltpu


# --------------------------------------------------------------------------
# VMEM / tiling helpers
# --------------------------------------------------------------------------
def _tpu_vmem_capacity_bytes():
    """Per-core VMEM capacity; conservative fallback = v7x (64 MiB)."""
    try:
        cap = int(pltpu.get_tpu_info().vmem_capacity_bytes)
        if cap > 0:
            return cap
    except Exception:
        pass
    return 64 << 20


def _pick_tile_rows(n_rows, n_cls, itemsize, vmem_budget_bytes):
    """Largest row tile whose per-step VMEM footprint fits the budget.

    Counts the *lane-padded* VMEM bytes of: the double-buffered emb_all block,
    the in-kernel f32 working copy + exp temporary, and the double-buffered
    lane-padded (T,1) int32 labels block.
    """
    lane = 128
    c_pad = ((max(n_cls, 1) + lane - 1) // lane) * lane
    bytes_per_row = (2 * c_pad * itemsize    # emb_all block, double-buffered
                     + 2 * c_pad * 4         # f32 working copy + exp temporary
                     + 2 * lane * 4)         # labels (T,1) int32, double-buffered
    tile = max(8, vmem_budget_bytes // bytes_per_row)
    if tile >= n_rows:
        return n_rows                        # full extent — always legal
    return max(8, (tile // 8) * 8)           # sublane-aligned partial tile


# --------------------------------------------------------------------------
# Cross-entropy (class loss) kernel: per-core partial sums of (lse - picked)
# --------------------------------------------------------------------------
def _make_class_kernel(n_rows, tile_rows, tiles_per_split):
    def kernel(logits_ref, labels_ref, partial_ref, acc_ref):
        split = pl.program_id(0)
        step = pl.program_id(1)
        nsteps = pl.num_programs(1)

        @pl.when(step == 0)
        def _init():
            acc_ref[...] = jnp.zeros_like(acc_ref)

        logits = logits_ref[...].astype(jnp.float32)          # (T, C)
        labels = labels_ref[...]                               # (T, 1) int32
        t, n_cls = logits.shape

        # Global row index from the *logical* tile index, so overflow tiles of
        # an uneven core split (and the padded tail of the last real tile) are
        # fully masked out regardless of what data was fetched.
        tile_idx = split * tiles_per_split + step
        row_ids = tile_idx * tile_rows + jax.lax.broadcasted_iota(
            jnp.int32, (t, 1), 0)
        valid = row_ids < n_rows

        # Single pass over the f32 tile: one subtraction feeds both reductions;
        # row_max cancels in (lse - picked).
        row_max = jnp.max(logits, axis=1, keepdims=True)        # (T, 1)
        shifted = logits - row_max                               # (T, C)
        col_ids = jax.lax.broadcasted_iota(jnp.int32, (t, n_cls), 1)
        exp_sum = jnp.sum(jnp.exp(shifted), axis=1, keepdims=True)       # (T, 1)
        # NOTE: labels are assumed to be valid class indices in [0, C).
        picked = jnp.sum(jnp.where(col_ids == labels, shifted, 0.0),
                         axis=1, keepdims=True)                          # (T, 1)
        per_row = jnp.where(valid, jnp.log(exp_sum) - picked, 0.0)
        acc_ref[...] += jnp.sum(per_row, keepdims=True)                  # (1, 1)

        @pl.when(step == nsteps - 1)
        def _finalize():
            # Lane-dense writeback of this core's partial sum (no masked vst).
            partial_ref[...] = jnp.broadcast_to(acc_ref[...], (1, 8, 128))

    return kernel


def _class_loss_partials(emb_all, labels2, *, tile_rows, n_splits,
                         tiles_per_split, vmem_limit):
    n_rows, n_cls = emb_all.shape
    total_tiles = pl.cdiv(n_rows, tile_rows)
    last_block = total_tiles - 1

    # Clamp the logical tile index so overflow tiles of an uneven split never
    # issue an out-of-range block fetch; their rows are masked in-kernel.
    def row_map(c, i):
        return (jnp.minimum(c * tiles_per_split + i, last_block), 0)

    itemsize = emb_all.dtype.itemsize
    cost = pl.CostEstimate(
        flops=int(6 * n_rows * n_cls + 8 * n_rows),
        transcendentals=int(n_rows * n_cls + n_rows),
        bytes_accessed=int(n_rows * n_cls * itemsize + n_rows * 4
                           + n_splits * 8 * 128 * 4),
    )

    return pl.pallas_call(
        _make_class_kernel(n_rows, tile_rows, tiles_per_split),
        out_shape=jax.ShapeDtypeStruct((n_splits, 8, 128), jnp.float32),
        grid_spec=pltpu.PrefetchScalarGridSpec(
            num_scalar_prefetch=0,
            grid=(n_splits, tiles_per_split),
            in_specs=[
                pl.BlockSpec((tile_rows, n_cls), row_map),   # emb_all tile
                pl.BlockSpec((tile_rows, 1), row_map),       # labels tile
            ],
            out_specs=pl.BlockSpec((1, 8, 128), lambda c, i: (c, 0, 0)),
            scratch_shapes=[pltpu.VMEM((1, 1), jnp.float32)],
        ),
        compiler_params=pltpu.CompilerParams(
            dimension_semantics=("parallel", "arbitrary"),
            vmem_limit_bytes=vmem_limit,
        ),
        cost_estimate=cost,
    )(emb_all, labels2)


# --------------------------------------------------------------------------
# Link-prediction loss: tiny single-step kernel, no input replication
# --------------------------------------------------------------------------
def _make_link_kernel(n_batch):
    inv_b = 1.0 / float(n_batch)

    def kernel(u_ref, v_ref, neg_ref, link_ref):
        u = u_ref[...].astype(jnp.float32)        # (B, D)
        v = v_ref[...].astype(jnp.float32)        # (B, D)
        neg = neg_ref[...].astype(jnp.float32)    # (B, K, D)

        def softplus(x):  # numerically-stable softplus(x) = -logsigmoid(-x)
            return jnp.maximum(x, 0.0) + jnp.log1p(jnp.exp(-jnp.abs(x)))

        # positive pairs: -logsigmoid(clamp(<u, v>))
        pos = jnp.clip(jnp.sum(u * v, axis=1, keepdims=True), -10.0, 10.0)   # (B,1)
        pos_loss = jnp.sum(softplus(-pos), keepdims=True)                    # (1,1)

        # negative pairs: broadcast u over K in-kernel (no HBM replication).
        neg_s = jnp.clip(jnp.sum(neg * jnp.expand_dims(u, 1), axis=2),
                         -10.0, 10.0)                                        # (B,K)
        neg_loss = jnp.sum(softplus(neg_s), keepdims=True)                   # (1,1)

        link_ref[...] = jnp.broadcast_to((pos_loss + neg_loss) * inv_b, (1, 128))

    return kernel


def _link_loss(u, v, neg, vmem_limit):
    b, d = u.shape
    k = neg.shape[1]
    cost = pl.CostEstimate(
        flops=int(4 * b * (k + 1) * d + 8 * b * (k + 1)),
        transcendentals=int(2 * b * (k + 1)),
        bytes_accessed=int((2 * b * d + b * k * d) * u.dtype.itemsize + 512),
    )
    return pl.pallas_call(
        _make_link_kernel(b),
        out_shape=jax.ShapeDtypeStruct((1, 128), jnp.float32),
        compiler_params=pltpu.CompilerParams(vmem_limit_bytes=vmem_limit),
        cost_estimate=cost,
    )(u, v, neg)


# --------------------------------------------------------------------------
# Public wrapper: matches CombinedLoss.forward
# --------------------------------------------------------------------------
def combined_loss(emb_all, labels, emb_u, emb_v, emb_neg_v, alpha, beta):
    n_rows, n_cls = emb_all.shape
    b = emb_u.shape[0]
    d = emb_u.shape[-1]

    labels2 = labels.reshape(n_rows, 1).astype(jnp.int32)

    # Per-generation VMEM sizing: limit ~= 3/4 physical, tile budget ~= 1/4
    # physical (=> 96/32 MiB on v5e/v6e, 48/16 MiB on v7x).
    vmem_cap = _tpu_vmem_capacity_bytes()
    vmem_limit = int(min(vmem_cap * 3 // 4, 112 << 20))
    tile_budget = vmem_cap // 4

    tile_rows = _pick_tile_rows(n_rows, n_cls, emb_all.dtype.itemsize, tile_budget)
    total_tiles = pl.cdiv(n_rows, tile_rows)

    # TODO(synk): derive the split count from the actual TensorCore count; 2 is
    # right for v7x and harmless (sequential) on single-core v5e/v6e.
    n_splits = 2 if total_tiles >= 2 else 1
    tiles_per_split = pl.cdiv(total_tiles, n_splits)

    partials = _class_loss_partials(
        emb_all, labels2,
        tile_rows=tile_rows, n_splits=n_splits,
        tiles_per_split=tiles_per_split, vmem_limit=vmem_limit)
    class_loss = jnp.sum(partials[:, 0, 0]) / n_rows

    link = _link_loss(emb_u.reshape(b, d), emb_v.reshape(b, d), emb_neg_v,
                      vmem_limit)
    link_loss = link[0, 0]

    combined = (1.0 / (2.0 * alpha * alpha) * class_loss
                + 1.0 / (2.0 * beta * beta) * link_loss
                + jnp.log(alpha * beta))
    return class_loss, link_loss, combined


# --------------------------------------------------------------------------
# Pure-JAX reference mirroring the PyTorch module
# --------------------------------------------------------------------------
def _reference(emb_all, labels, emb_u, emb_v, emb_neg_v, alpha, beta):
    logits = emb_all.astype(jnp.float32)
    logp = jax.nn.log_softmax(logits, axis=1)
    class_loss = -jnp.mean(jnp.take_along_axis(logp, labels[:, None], axis=1))

    u = emb_u[:, 0, :]
    v = emb_v[:, 0, :]
    score = jnp.clip(jnp.sum(u * v, axis=1), -10.0, 10.0)
    pos = -jax.nn.log_sigmoid(score)
    neg = jnp.clip(jnp.einsum("bkd,bd->bk", emb_neg_v, u), -10.0, 10.0)
    negs = -jnp.sum(jax.nn.log_sigmoid(-neg), axis=1)
    link_loss = jnp.mean(pos + negs)

    combined = (1.0 / (2.0 * alpha * alpha) * class_loss
                + 1.0 / (2.0 * beta * beta) * link_loss
                + jnp.log(alpha * beta))
    return class_loss, link_loss, combined


if __name__ == "__main__":
    key = jax.random.PRNGKey(0)
    k1, k2, k3, k4, k5 = jax.random.split(key, 5)

    N, C = 16, 8        # nodes x classes for the classification head
    B, K, D = 8, 5, 32  # batch x num_negatives x embedding dim

    emb_all = jax.random.normal(k1, (N, C), dtype=jnp.float32)
    labels = jax.random.randint(k2, (N,), 0, C, dtype=jnp.int32)
    emb_u = jax.random.normal(k3, (B, 1, D), dtype=jnp.float32)
    emb_v = jax.random.normal(k4, (B, 1, D), dtype=jnp.float32)
    emb_neg_v = jax.random.normal(k5, (B, K, D), dtype=jnp.float32)

    # Parameters: torch uniform_(1, 1) initializes alpha = beta = 1.0 exactly.
    alpha = jnp.float32(1.0)
    beta = jnp.float32(1.0)

    cls_l, lnk_l, comb_l = combined_loss(
        emb_all, labels, emb_u, emb_v, emb_neg_v, alpha, beta)
    jax.block_until_ready(comb_l)

    cls_r, lnk_r, comb_r = _reference(
        emb_all, labels, emb_u, emb_v, emb_neg_v, alpha, beta)

    assert jnp.allclose(cls_l, cls_r, rtol=1e-5, atol=1e-5), (cls_l, cls_r)
    assert jnp.allclose(lnk_l, lnk_r, rtol=1e-5, atol=1e-5), (lnk_l, lnk_r)
    assert jnp.allclose(comb_l, comb_r, rtol=1e-5, atol=1e-5), (comb_l, comb_r)

    print("KERNEL_OK")
</pallas_src>

<mosaic_0001>
module attributes {stable_mosaic.version = 11 : i64} {
  func.func @kernel(%arg0: i32, %arg1: i32, %arg2: memref<16x8xf32, #tpu.memory_space<vmem>>, %arg3: memref<16x1xi32, #tpu.memory_space<vmem>>, %arg4: memref<1x8x128xf32, #tpu.memory_space<vmem>>, %arg5: memref<1x1xf32, #tpu.memory_space<vmem>>) attributes {dimension_semantics = [#tpu.dimension_semantics<parallel>, #tpu.dimension_semantics<arbitrary>], iteration_bounds = array<i64: 1, 1>, scalar_prefetch = 0 : i64, scratch_operands = 1 : i64, tpu.core_type = #tpu.core_type<tc>, window_params = [{transform_indices = @transform_0, window_bounds = array<i64: 16, 8>}, {transform_indices = @transform_1, window_bounds = array<i64: 16, 1>}, {transform_indices = @transform_2, window_bounds = array<i64: 1, 8, 128>}]} {
    %c0_i32 = arith.constant 0 : i32
    %0 = arith.cmpi eq, %arg1, %c0_i32 : i32
    %1 = arith.extui %0 : i1 to i32
    %c0_i32_0 = arith.constant 0 : i32
    %2 = arith.cmpi ne, %1, %c0_i32_0 : i32
    scf.if %2 {
      %cst_16 = arith.constant 0.000000e+00 : f32
      %42 = vector.broadcast %cst_16 : f32 to vector<1x1xf32>
      %c0_17 = arith.constant 0 : index
      %c0_18 = arith.constant 0 : index
      %43 = vector.load %arg5[%c0_17, %c0_18] : memref<1x1xf32, #tpu.memory_space<vmem>>, vector<1x1xf32>
      tpu.vector_store %arg5[%c0_17, %c0_18], %42 {strides = array<i32>} : memref<1x1xf32, #tpu.memory_space<vmem>>, vector<1x1xf32>,
    } else {
    }
    %c0 = arith.constant 0 : index
    %c0_1 = arith.constant 0 : index
    %3 = vector.load %arg2[%c0, %c0_1] : memref<16x8xf32, #tpu.memory_space<vmem>>, vector<16x8xf32>
    %c0_2 = arith.constant 0 : index
    %c0_3 = arith.constant 0 : index
    %4 = vector.load %arg3[%c0_2, %c0_3] : memref<16x1xi32, #tpu.memory_space<vmem>>, vector<16x1xi32>
    %c1_i32 = arith.constant 1 : i32
    %5 = arith.muli %arg0, %c1_i32 : i32
    %6 = arith.addi %5, %arg1 : i32
    %c16_i32 = arith.constant 16 : i32
    %7 = arith.muli %6, %c16_i32 : i32
    %8 = tpu.iota {dimensions = array<i32: 0>} : vector<16x1xi32>
    %9 = vector.broadcast %7 : i32 to vector<16x1xi32>
    %10 = arith.addi %9, %8 : vector<16x1xi32>
    %c16_i32_4 = arith.constant 16 : i32
    %11 = vector.broadcast %c16_i32_4 : i32 to vector<16x1xi32>
    %12 = arith.cmpi slt, %10, %11 : vector<16x1xi32>
    %cst = arith.constant dense<0xFF800000> : vector<16xf32>
    %13 = vector.multi_reduction <maximumf>, %3, %cst [1] : vector<16x8xf32> to vector<16xf32>
    %14 = vector.shape_cast %13 : vector<16xf32> to vector<16x1xf32>
    %15 = vector.broadcast %14 : vector<16x1xf32> to vector<16x8xf32>
    %16 = arith.subf %3, %15 : vector<16x8xf32>
    %17 = tpu.iota {dimensions = array<i32: 1>} : vector<16x8xi32>
    %18 = math.exp %16 : vector<16x8xf32>
    %cst_5 = arith.constant dense<0.000000e+00> : vector<16xf32>
    %19 = vector.multi_reduction <add>, %18, %cst_5 [1] : vector<16x8xf32> to vector<16xf32>
    %20 = vector.shape_cast %19 : vector<16xf32> to vector<16x1xf32>
    %21 = vector.broadcast %4 : vector<16x1xi32> to vector<16x8xi32>
    %22 = arith.cmpi eq, %17, %21 : vector<16x8xi32>
    %cst_6 = arith.constant 0.000000e+00 : f32
    %23 = vector.broadcast %cst_6 : f32 to vector<16x8xf32>
    %24 = arith.select %22, %16, %23 : vector<16x8xi1>, vector<16x8xf32>
    %cst_7 = arith.constant dense<0.000000e+00> : vector<16xf32>
    %25 = vector.multi_reduction <add>, %24, %cst_7 [1] : vector<16x8xf32> to vector<16xf32>
    %26 = vector.shape_cast %25 : vector<16xf32> to vector<16x1xf32>
    %27 = math.log %20 : vector<16x1xf32>
    %28 = arith.subf %27, %26 : vector<16x1xf32>
    %cst_8 = arith.constant 0.000000e+00 : f32
    %29 = vector.broadcast %cst_8 : f32 to vector<16x1xf32>
    %30 = arith.select %12, %28, %29 : vector<16x1xi1>, vector<16x1xf32>
    %c0_9 = arith.constant 0 : index
    %c0_10 = arith.constant 0 : index
    %31 = vector.load %arg5[%c0_9, %c0_10] : memref<1x1xf32, #tpu.memory_space<vmem>>, vector<1x1xf32>
    %32 = vector.shape_cast %30 : vector<16x1xf32> to vector<1x16x1xf32>
    %cst_11 = arith.constant dense<0.000000e+00> : vector<1xf32>
    %33 = vector.multi_reduction <add>, %32, %cst_11 [1, 2] : vector<1x16x1xf32> to vector<1xf32>
    %34 = vector.shape_cast %33 : vector<1xf32> to vector<1x1x1xf32>
    %35 = vector.extract %34[0, 0, 0] : f32 from vector<1x1x1xf32>
    %36 = vector.broadcast %35 : f32 to vector<1x1xf32>
    %37 = arith.addf %31, %36 : vector<1x1xf32>
    %c0_12 = arith.constant 0 : index
    %c0_13 = arith.constant 0 : index
    %38 = vector.load %arg5[%c0_12, %c0_13] : memref<1x1xf32, #tpu.memory_space<vmem>>, vector<1x1xf32>
    tpu.vector_store %arg5[%c0_12, %c0_13], %37 {strides = array<i32>} : memref<1x1xf32, #tpu.memory_space<vmem>>, vector<1x1xf32>,
    %c0_i32_14 = arith.constant 0 : i32
    %39 = arith.cmpi eq, %arg1, %c0_i32_14 : i32
    %40 = arith.extui %39 : i1 to i32
    %c0_i32_15 = arith.constant 0 : i32
    %41 = arith.cmpi ne, %40, %c0_i32_15 : i32
    scf.if %41 {
      %c0_16 = arith.constant 0 : index
      %c0_17 = arith.constant 0 : index
      %42 = vector.load %arg5[%c0_16, %c0_17] : memref<1x1xf32, #tpu.memory_space<vmem>>, vector<1x1xf32>
      %43 = vector.shape_cast %42 : vector<1x1xf32> to vector<1x1x1xf32>
      %44 = vector.broadcast %43 : vector<1x1x1xf32> to vector<1x8x128xf32>
      %c0_18 = arith.constant 0 : index
      %c0_19 = arith.constant 0 : index
      %c0_20 = arith.constant 0 : index
      %45 = vector.load %arg4[%c0_18, %c0_19, %c0_20] : memref<1x8x128xf32, #tpu.memory_space<vmem>>, vector<1x8x128xf32>
      tpu.vector_store %arg4[%c0_18, %c0_19, %c0_20], %44 {strides = array<i32>} : memref<1x8x128xf32, #tpu.memory_space<vmem>>, vector<1x8x128xf32>,
    } else {
    }
    return
  }
  func.func @transform_0(%arg0: i32, %arg1: i32) -> (i32, i32) {
    %c1_i32 = arith.constant 1 : i32
    %0 = arith.muli %arg0, %c1_i32 : i32
    %1 = arith.addi %0, %arg1 : i32
    %c0_i32 = arith.constant 0 : i32
    %2 = arith.minsi %1, %c0_i32 : i32
    %c0_i32_0 = arith.constant 0 : i32
    %c0_i32_1 = arith.constant 0 : i32
    return %2, %c0_i32_0 : i32, i32
  }
  func.func @transform_1(%arg0: i32, %arg1: i32) -> (i32, i32) {
    %c1_i32 = arith.constant 1 : i32
    %0 = arith.muli %arg0, %c1_i32 : i32
    %1 = arith.addi %0, %arg1 : i32
    %c0_i32 = arith.constant 0 : i32
    %2 = arith.minsi %1, %c0_i32 : i32
    %c0_i32_0 = arith.constant 0 : i32
    %c0_i32_1 = arith.constant 0 : i32
    return %2, %c0_i32_0 : i32, i32
  }
  func.func @transform_2(%arg0: i32, %arg1: i32) -> (i32, i32, i32) {
    %c0_i32 = arith.constant 0 : i32
    %c0_i32_0 = arith.constant 0 : i32
    %c0_i32_1 = arith.constant 0 : i32
    return %arg0, %c0_i32, %c0_i32_0 : i32, i32, i32
  }
}

</mosaic_0001>

<bundles_post_ra>
// kernel: tpu_custom_call.1
= control target key start
LH: loop header
LB: loop body
LE: loop exit
PB: predicated region body
PF: predicated region fallthrough
CT: control target
= control target key end

     0   :  { %vm96_vm0 = vcmask 64512   ;;  %v239_v4 = vmov 0   ;;  %s287_s0 = inlined_call_operand.vmem [shape: f32[16,8], index: 0, kind: input, shape index: {}]   ;;  %s288_s1 = inlined_call_operand.vmem [shape: s32[16,1], index: 1, kind: input, shape index: {}]   ;;  %s289_s2 = inlined_call_operand.hbm [shape: f32[1,8,128], index: 2, kind: output, shape index: {}]  }
   0x1   :  { %v82_v0 = vld [vmem:[%s287_s0] sm:$0xff]  ;;  %v83_v1 = vld [vmem:[%s287_s0 + $0x8] sm:$0xff]  ;;  %205 = vset.pattern.permute.xlu1 %v239_v4  ;;  %206 = vset.pattern.permute.xlu0 %v239_v4 }
   0x2   :  { %v84_v2 = vld [vmem:[%s288_s1] sm:$0xff]  ;;  %v97_v3 = vsel %vm96_vm0, %v82_v0, -inf }
   0x3   :  { %7 = vsyncpa [#allocation4], 0  ;;  %98 = vmax.xlane.f32.xlu0 %v97_v3  ;;  %118 = vperm.xlu1 %205, %v84_v2   ;;  %v100_v5 = vsel %vm96_vm0, %v83_v1, -inf  ;;  %v85_v6 = vld [vmem:[%s288_s1 + $0x8] sm:$0xff]  ;;  %v105_v12 = vlaneseq  ;;  %vm142_vm3 = vcmask 7168   ;;  %vm80_vm4 = vcmask 0  }
   0x4   :  { %v240_v38 = vmov 0.0   ;;  %s241_s1 = smov [#allocation3]  }
   0x5   :  { %v106_v15 = vand.u32 127, %v105_v12  ;;  %81 = vst.msk [vmem:[#allocation2] sm:$0x1] %vm80_vm4, %v240_v38  ;;  %s179_s17 = sshll.u32 %s241_s1, 4  ;;  %s180_s17 = int_to_ptr.vmem [resolvable:$true] %s179_s17 }
   0x6   :  { %s215_s18 = scalar_lea.vmem %s180_s17, 128  ;;  %p220_p1 = scmp.lt.s32.totalorder %s180_s17, %s180_s17 }
   0x7   :  { %101 = vmax.xlane.f32.xlu0 %v100_v5  ;;  %121 = vperm.xlu1 %205, %v85_v6   ;;  %p216_p0 = scmp.ne.s32.totalorder %s180_s17, %s215_s18  ;;  %p221_p2 = scmp.lt.s32.totalorder %s215_s18, %s215_s18 }
   0x9   :  { %p222_p3 = por %p221_p2, %p220_p1 }
   0xb   :  { %p223_p4 = pnand %p222_p3, %p216_p0 }
   0xc   :  { %v141_v46 = vld [vmem:[#allocation2] sm:$0x1] }
  0x82   :  { %v119_v14 = vpop.permute.xlu1 %118 }
  0x83   :  { %vm123_vm1 = vcmp.eq.s32.totalorder %v106_v15, %v119_v14 }
  0x86   :  { %v122_v17 = vpop.permute.xlu1 %121 }
  0x87   :  { %vm124_vm2 = vcmp.eq.s32.totalorder %v106_v15, %v122_v17 }
  0x90   :  { %v99_v7 = vpop.xlane.xlu0 %98 }
  0x91   :  { %v103_v8 = vsub.f32 %v82_v0, %v99_v7 }
  0x93   :  { %v107_v9 = vmul.f32 1.442695, %v103_v8  ;;  %v125_v19 = vsel %vm123_vm1, %v103_v8, 0.0 }
  0x94   :  { %v102_v10 = vpop.xlane.xlu0 %101  ;;  %v127_v21 = vsel %vm96_vm0, %v125_v19, 0.0 }
  0x95   :  { %207 = vpow2.f32 %v107_v9  ;;  %v104_v11 = vsub.f32 %v83_v1, %v102_v10 }
  0x97   :  { %v109_v13 = vmul.f32 1.442695, %v104_v11  ;;  %v126_v23 = vsel %vm124_vm2, %v104_v11, 0.0 }
  0x98   :  { %v130_v24 = vsel %vm96_vm0, %v126_v23, 0.0 }
  0x99   :  { %209 = vpow2.f32 %v109_v13 }
  0x9f   :  { %v208_v16 = vpop.eup %207 }
  0xa0   :  { %v111_v18 = vsel %vm96_vm0, %v208_v16, 0.0 }
  0xa1   :  { %112 = vadd.xlane.f32.xlu0 %v111_v18 }
  0xa3   :  { %v210_v20 = vpop.eup %209 }
  0xa4   :  { %v114_v22 = vsel %vm96_vm0, %v210_v20, 0.0 }
  0xa5   :  { %128 = vadd.xlane.f32.xlu0 %v127_v21  ;;  %115 = vadd.xlane.f32.xlu1 %v114_v22 }
  0xa9   :  { %131 = vadd.xlane.f32.xlu0 %v130_v24 }
 0x12e   :  { %v113_v25 = vpop.xlane.xlu0 %112 }
 0x12f   :  { %211 = vlog2.f32 %v113_v25 }
 0x132   :  { %v116_v26 = vpop.xlane.xlu1 %115  ;;  %v129_v28 = vpop.xlane.xlu0 %128 }
 0x133   :  { %213 = vlog2.f32 %v116_v26 }
 0x136   :  { %v132_v33 = vpop.xlane.xlu0 %131 }
 0x139   :  { %v212_v27 = vpop.eup %211 }
 0x13a   :  { %v134_v29 = vmul.f32 0.6931472, %v212_v27 }
 0x13c   :  { %v137_v31 = vsub.f32 %v134_v29, %v129_v28 }
 0x13d   :  { %v214_v30 = vpop.eup %213 }
 0x13e   :  { %v136_v32 = vmul.f32 0.6931472, %v214_v30  ;;  %v143_v35 = vsel %vm142_vm3, %v137_v31, 0.0 }
 0x140   :  { %v138_v34 = vsub.f32 %v136_v32, %v132_v33 }
 0x142   :  { %v144_v36 = vsel %vm142_vm3, %v138_v34, 0.0 }
 0x143   :  { %v145_v37 = vadd.f32 %v144_v36, %v143_v35 }
 0x145   :  { %146 = vadd.xlane.f32.xlu0 %v145_v37 }
 0x1d2   :  { %v147_v39 = vpop.xlane.xlu0 %146 }
 0x1d3   :  { %v148_v40 = vrot.slane %v147_v39, 4 }
 0x1d5   :  { %v149_v41 = vadd.f32 %v148_v40, %v147_v39 }
 0x1d7   :  { %v150_v42 = vrot.slane %v149_v41, 2 }
 0x1d9   :  { %v151_v43 = vadd.f32 %v150_v42, %v149_v41 }
 0x1db   :  { %v152_v44 = vrot.slane %v151_v43, 1 }
 0x1dd   :  { %v153_v45 = vadd.f32 %v152_v44, %v151_v43 }
 0x1df   :  { %200 = vpush %v153_v45 }
 0x210   :  { %s201_s0 = spop %200 }
 0x211   :  { %v155_v47 = vstv %s201_s0 }
 0x212   :  { %v156_v48 = vadd.f32 %v155_v47, %v141_v46 }
 0x214   :  { %158 = vst.msk [vmem:[#allocation2] sm:$0x1] %vm80_vm4, %v156_v48 }
 0x21b   :  { %v199_v49 = vld [vmem:[#allocation2] ss:$0 sm:$0xff] }
 0x21c   :  { %169 = vperm.xlu0 %206, %v199_v49  }
 0x29b   :  { %v170_v50 = vpop.permute.xlu0 %169 }
 0x29c   :  { %172 = vst [vmem:[#allocation3] sm:$0xff] %v170_v50 }
 0x29d   :  { %226 = shalt.err (!%p223_p4)
}
 0x29e   :  { %s227_s21 = scalar_lea.hbm %s289_s2, 128 }
 0x29f   :  { %p228_p5 = scmp.ne.s32.totalorder %s289_s2, %s227_s21  ;;  %p231_p6 = scmp.lt.u32.totalorder %s227_s21, %s289_s2 }
 0x2a1   :  { %p233_p7 = pnand %p231_p6, %p228_p5 }
 0x2a3   :  { %236 = shalt.err (!%p233_p7)
}
 0x2a4   :  { %182 = dma.vmem_to_hbm [thread:$0]  %s180_s17, 128, %s289_s2, [#allocation4]  }
 0x2a5   :  { %237 = dma.done.wait [#allocation4], 128  }
 0x2a6   :  { %238 = vsyncadd [#allocation4], 4294967168 }
 0x2a7   :  { %186 = vsyncpa [#allocation4], 1 }

</bundles_post_ra>
